<compile_context>
chip_gen: v7x
topology: tpu7x:2x2x1
jax: 0.10.0
libtpu: 0.0.40
codegen_flags: <defaults>
</compile_context>

<pallas_src>
import functools

import jax
import jax.numpy as jnp
from jax import lax
from jax.experimental import pallas as pl
from jax.experimental.pallas import tpu as pltpu


def _attention_kernel(qf_ref, kf_ref, wq_ref, bq_ref, wkv_ref, bkv_ref, o_ref,
                      *, cmid):
    """One batch element per grid step (channel-major layout).

    qf_ref : [1, Cq, HWq]   query features (channels x tokens)
    kf_ref : [1, Ck, HWk]   key features
    wq_ref : [Cmid, Cq]     query 1x1-conv weight (scale pre-folded)
    bq_ref : [Cmid, 1]      query bias (scale pre-folded)
    wkv_ref: [Cmid+Cout+1, Ck]  fused key|value|ones-row weights
    bkv_ref: [Cmid+Cout+1, 1]   fused key|value|ones-row biases
    o_ref  : [1, Cout, HWq]
    """
    qf = qf_ref[0]  # [Cq, HWq]
    kf = kf_ref[0]  # [Ck, HWk]

    # 1x1 convs as channel-contracting matmuls, fp32 accumulation on the MXU.
    q = jnp.dot(wq_ref[...], qf, preferred_element_type=jnp.float32) + bq_ref[...]
    kv = jnp.dot(wkv_ref[...], kf, preferred_element_type=jnp.float32) + bkv_ref[...]
    k = kv[:cmid]       # [Cmid, HWk]
    v_aug = kv[cmid:]   # [Cout+1, HWk]; last row is all ones (softmax denom)

    # sim[i, j] = sum_c q[c, i] * k[c, j]   (matmul_norm scale already in q)
    sim = lax.dot_general(q, k, (((0,), (0,)), ((), ())),
                          preferred_element_type=jnp.float32)  # [HWq, HWk]

    # Numerically-stable, *unnormalized* softmax numerator.
    p = jnp.exp(sim - jnp.max(sim, axis=-1, keepdims=True))    # [HWq, HWk]

    # ctx_aug[c, i] = sum_j v_aug[c, j] * p[i, j]; last row == softmax denom,
    # already laid out as [1, HWq] (lane-aligned with the output).
    ctx_aug = lax.dot_general(v_aug.astype(jnp.bfloat16),
                              p.astype(jnp.bfloat16),
                              (((1,), (1,)), ((), ())),
                              preferred_element_type=jnp.float32)  # [Cout+1, HWq]

    cout = ctx_aug.shape[0] - 1
    inv = pl.reciprocal(ctx_aug[cout:cout + 1, :], approx=True)    # [1, HWq]
    o_ref[0] = (ctx_aug[:cout, :] * inv).astype(o_ref.dtype)


def self_attention_block(query_feats, key_feats, params, *, channels,
                         matmul_norm=True):
    """Pallas implementation of SelfAttentionBlock.forward (with_out=False).

    params: (wq, bq, wk, bk, wv, bv) with conv-style weights [C_out, C_in]
            and biases [C_out].
    """
    wq, bq, wk, bk, wv, bv = params
    B, Cq, H, W = query_feats.shape
    _, Ck, Hk, Wk = key_feats.shape
    HWq, HWk = H * W, Hk * Wk
    Cmid = wq.shape[0]
    Cout = wv.shape[0]
    scale = float(channels) ** (-0.5) if matmul_norm else 1.0

    # NCHW -> [B, C, HW]: pure reshape, channels stay major, tokens on lanes.
    qf = query_feats.reshape(B, Cq, HWq)
    kf = key_feats.reshape(B, Ck, HWk)

    # Fold the matmul_norm scale into the query projection (trace time).
    wq_s = (wq * scale).astype(jnp.float32)
    bq_s = (bq * scale).reshape(Cmid, 1).astype(jnp.float32)

    # Fuse key/value projections; append zero-weight / one-bias row so the
    # fused projection also yields a row of ones used as the softmax denom.
    wkv = jnp.concatenate(
        [wk, wv, jnp.zeros((1, Ck), wk.dtype)], axis=0).astype(jnp.float32)
    bkv = jnp.concatenate(
        [bk, bv, jnp.ones((1,), bk.dtype)], axis=0).reshape(-1, 1).astype(jnp.float32)
    Ckv = Cmid + Cout + 1

    kern = functools.partial(_attention_kernel, cmid=Cmid)

    out = pl.pallas_call(
        kern,
        out_shape=jax.ShapeDtypeStruct((B, Cout, HWq), jnp.float32),
        grid_spec=pltpu.PrefetchScalarGridSpec(
            num_scalar_prefetch=0,
            grid=(B,),
            in_specs=[
                pl.BlockSpec((1, Cq, HWq), lambda b: (b, 0, 0)),
                pl.BlockSpec((1, Ck, HWk), lambda b: (b, 0, 0)),
                # Constant index_maps: params stay VMEM-resident across steps.
                pl.BlockSpec((Cmid, Cq), lambda b: (0, 0)),
                pl.BlockSpec((Cmid, 1), lambda b: (0, 0)),
                pl.BlockSpec((Ckv, Ck), lambda b: (0, 0)),
                pl.BlockSpec((Ckv, 1), lambda b: (0, 0)),
            ],
            out_specs=pl.BlockSpec((1, Cout, HWq), lambda b: (b, 0, 0)),
        ),
        compiler_params=pltpu.CompilerParams(
            dimension_semantics=("parallel",)),
    )(qf, kf, wq_s, bq_s, wkv, bkv)

    # [B, Cout, HWq] -> NCHW [B, Cout, H, W]: pure reshape, no transpose.
    return out.reshape(B, Cout, H, W)


def _reference(query_feats, key_feats, params, *, channels, matmul_norm=True):
    """Pure-JAX reference mirroring the PyTorch forward."""
    wq, bq, wk, bk, wv, bv = params

    def conv1x1(x, w, b):  # x: [B, Cin, H, W], w: [Cout, Cin], b: [Cout]
        return jnp.einsum("oc,bchw->bohw", w, x) + b[None, :, None, None]

    B, _, H, W = query_feats.shape
    query = conv1x1(query_feats, wq, bq).reshape(B, -1, H * W)
    query = jnp.transpose(query, (0, 2, 1))                       # [B, HWq, Cmid]
    key = conv1x1(key_feats, wk, bk).reshape(B, wk.shape[0], -1)  # [B, Cmid, HWk]
    value = conv1x1(key_feats, wv, bv).reshape(B, wv.shape[0], -1)
    value = jnp.transpose(value, (0, 2, 1))                       # [B, HWk, Cout]
    sim = jnp.matmul(query, key)                                  # [B, HWq, HWk]
    if matmul_norm:
        sim = (float(channels) ** -0.5) * sim
    sim = jax.nn.softmax(sim, axis=-1)
    ctx = jnp.matmul(sim, value)                                  # [B, HWq, Cout]
    return jnp.transpose(ctx, (0, 2, 1)).reshape(B, -1, H, W)


if __name__ == "__main__":
    B, Cin, H, W = 2, 4, 16, 16
    channels, out_channels = 32, 16

    key = jax.random.PRNGKey(0)
    ks = jax.random.split(key, 8)

    query_feats = jax.random.normal(ks[0], (B, Cin, H, W), jnp.float32)
    key_feats = jax.random.normal(ks[1], (B, Cin, H, W), jnp.float32)

    # 1x1 conv params in PyTorch layout: weight [C_out, C_in], bias [C_out].
    wq = jax.random.normal(ks[2], (channels, Cin), jnp.float32) * 0.1
    bq = jax.random.normal(ks[3], (channels,), jnp.float32) * 0.1
    wk = jax.random.normal(ks[4], (channels, Cin), jnp.float32) * 0.1
    bk = jax.random.normal(ks[5], (channels,), jnp.float32) * 0.1
    wv = jax.random.normal(ks[6], (out_channels, Cin), jnp.float32) * 0.1
    bv = jax.random.normal(ks[7], (out_channels,), jnp.float32) * 0.1
    params = (wq, bq, wk, bk, wv, bv)

    out = self_attention_block(query_feats, key_feats, params,
                               channels=channels, matmul_norm=True)
    out = jax.block_until_ready(out)

    ref = _reference(query_feats, key_feats, params,
                     channels=channels, matmul_norm=True)
    assert out.shape == (B, out_channels, H, W), out.shape
    # bf16 PV matmul + approx reciprocal -> slightly relaxed tolerance.
    assert jnp.allclose(out, ref, atol=1e-2, rtol=1e-2), "mismatch vs reference"

    print("KERNEL_OK")
</pallas_src>

<mosaic_0001>
module attributes {stable_mosaic.version = 11 : i64} {
  func.func @_attention_kernel(%arg0: i32, %arg1: memref<1x4x256xf32, #tpu.memory_space<vmem>>, %arg2: memref<1x4x256xf32, #tpu.memory_space<vmem>>, %arg3: memref<32x4xf32, #tpu.memory_space<vmem>>, %arg4: memref<32x1xf32, #tpu.memory_space<vmem>>, %arg5: memref<49x4xf32, #tpu.memory_space<vmem>>, %arg6: memref<49x1xf32, #tpu.memory_space<vmem>>, %arg7: memref<1x16x256xf32, #tpu.memory_space<vmem>>) attributes {dimension_semantics = [#tpu.dimension_semantics<parallel>], iteration_bounds = array<i64: 2>, scalar_prefetch = 0 : i64, scratch_operands = 0 : i64, tpu.core_type = #tpu.core_type<tc>, window_params = [{transform_indices = @transform_0, window_bounds = array<i64: 1, 4, 256>}, {transform_indices = @transform_1, window_bounds = array<i64: 1, 4, 256>}, {pipeline_mode = #tpu.pipeline_mode<synchronous>, transform_indices = @transform_2, window_bounds = array<i64: 32, 4>}, {pipeline_mode = #tpu.pipeline_mode<synchronous>, transform_indices = @transform_3, window_bounds = array<i64: 32, 1>}, {pipeline_mode = #tpu.pipeline_mode<synchronous>, transform_indices = @transform_4, window_bounds = array<i64: 49, 4>}, {pipeline_mode = #tpu.pipeline_mode<synchronous>, transform_indices = @transform_5, window_bounds = array<i64: 49, 1>}, {transform_indices = @transform_6, window_bounds = array<i64: 1, 16, 256>}]} {
    %c0 = arith.constant 0 : index
    %c0_0 = arith.constant 0 : index
    %c0_1 = arith.constant 0 : index
    %0 = vector.load %arg1[%c0, %c0_0, %c0_1] : memref<1x4x256xf32, #tpu.memory_space<vmem>>, vector<1x4x256xf32>
    %1 = vector.shape_cast %0 : vector<1x4x256xf32> to vector<4x256xf32>
    %c0_2 = arith.constant 0 : index
    %c0_3 = arith.constant 0 : index
    %c0_4 = arith.constant 0 : index
    %2 = vector.load %arg2[%c0_2, %c0_3, %c0_4] : memref<1x4x256xf32, #tpu.memory_space<vmem>>, vector<1x4x256xf32>
    %3 = vector.shape_cast %2 : vector<1x4x256xf32> to vector<4x256xf32>
    %c0_5 = arith.constant 0 : index
    %c0_6 = arith.constant 0 : index
    %4 = vector.load %arg3[%c0_5, %c0_6] : memref<32x4xf32, #tpu.memory_space<vmem>>, vector<32x4xf32>
    %cst = arith.constant dense<0.000000e+00> : vector<32x256xf32>
    %5 = tpu.matmul %4, %1, %cst {dimension_numbers = #tpu.dot_dimension_numbers<[1], [0], [0], [1], [0, 0, 1, 1], [], []>} : vector<32x4xf32>, vector<4x256xf32>, vector<32x256xf32> -> vector<32x256xf32>
    %c0_7 = arith.constant 0 : index
    %c0_8 = arith.constant 0 : index
    %6 = vector.load %arg4[%c0_7, %c0_8] : memref<32x1xf32, #tpu.memory_space<vmem>>, vector<32x1xf32>
    %7 = vector.broadcast %6 : vector<32x1xf32> to vector<32x256xf32>
    %8 = arith.addf %5, %7 : vector<32x256xf32>
    %c0_9 = arith.constant 0 : index
    %c0_10 = arith.constant 0 : index
    %9 = vector.load %arg5[%c0_9, %c0_10] : memref<49x4xf32, #tpu.memory_space<vmem>>, vector<49x4xf32>
    %cst_11 = arith.constant dense<0.000000e+00> : vector<49x256xf32>
    %10 = tpu.matmul %9, %3, %cst_11 {dimension_numbers = #tpu.dot_dimension_numbers<[1], [0], [0], [1], [0, 0, 1, 1], [], []>} : vector<49x4xf32>, vector<4x256xf32>, vector<49x256xf32> -> vector<49x256xf32>
    %c0_12 = arith.constant 0 : index
    %c0_13 = arith.constant 0 : index
    %11 = vector.load %arg6[%c0_12, %c0_13] : memref<49x1xf32, #tpu.memory_space<vmem>>, vector<49x1xf32>
    %12 = vector.broadcast %11 : vector<49x1xf32> to vector<49x256xf32>
    %13 = arith.addf %10, %12 : vector<49x256xf32>
    %14 = vector.extract_strided_slice %13 {offsets = [0, 0], sizes = [32, 256], strides = [1, 1]} : vector<49x256xf32> to vector<32x256xf32>
    %15 = vector.extract_strided_slice %13 {offsets = [32, 0], sizes = [17, 256], strides = [1, 1]} : vector<49x256xf32> to vector<17x256xf32>
    %cst_14 = arith.constant dense<0.000000e+00> : vector<256x256xf32>
    %16 = tpu.matmul %8, %14, %cst_14 {dimension_numbers = #tpu.dot_dimension_numbers<[0], [0], [1], [1], [0, 1, 1, 1], [], []>} : vector<32x256xf32>, vector<32x256xf32>, vector<256x256xf32> -> vector<256x256xf32>
    %cst_15 = arith.constant dense<0xFF800000> : vector<256xf32>
    %17 = vector.multi_reduction <maximumf>, %16, %cst_15 [1] : vector<256x256xf32> to vector<256xf32>
    %18 = vector.shape_cast %17 : vector<256xf32> to vector<256x1xf32>
    %19 = vector.broadcast %18 : vector<256x1xf32> to vector<256x256xf32>
    %20 = arith.subf %16, %19 : vector<256x256xf32>
    %21 = math.exp %20 : vector<256x256xf32>
    %22 = arith.truncf %15 : vector<17x256xf32> to vector<17x256xbf16>
    %23 = arith.truncf %21 : vector<256x256xf32> to vector<256x256xbf16>
    %cst_16 = arith.constant dense<0.000000e+00> : vector<17x256xf32>
    %24 = tpu.matmul %22, %23, %cst_16 {dimension_numbers = #tpu.dot_dimension_numbers<[1], [1], [0], [0], [0, 0, 1, 0], [], []>} : vector<17x256xbf16>, vector<256x256xbf16>, vector<17x256xf32> -> vector<17x256xf32>
    %25 = vector.extract_strided_slice %24 {offsets = [16, 0], sizes = [1, 256], strides = [1, 1]} : vector<17x256xf32> to vector<1x256xf32>
    %26 = tpu.reciprocal %25 {approx = true} : vector<1x256xf32> -> vector<1x256xf32>
    %27 = vector.extract_strided_slice %24 {offsets = [0, 0], sizes = [16, 256], strides = [1, 1]} : vector<17x256xf32> to vector<16x256xf32>
    %28 = vector.broadcast %26 : vector<1x256xf32> to vector<16x256xf32>
    %29 = arith.mulf %27, %28 : vector<16x256xf32>
    %c0_17 = arith.constant 0 : index
    %c0_18 = arith.constant 0 : index
    %c0_19 = arith.constant 0 : index
    %30 = vector.load %arg7[%c0_17, %c0_18, %c0_19] : memref<1x16x256xf32, #tpu.memory_space<vmem>>, vector<1x16x256xf32>
    %31 = vector.shape_cast %30 : vector<1x16x256xf32> to vector<16x256xf32>
    %32 = vector.shape_cast %29 : vector<16x256xf32> to vector<1x16x256xf32>
    tpu.vector_store %arg7[%c0_17, %c0_18, %c0_19], %32 {strides = array<i32>} : memref<1x16x256xf32, #tpu.memory_space<vmem>>, vector<1x16x256xf32>,
    return
  }
  func.func @transform_0(%arg0: i32) -> (i32, i32, i32) {
    %c0_i32 = arith.constant 0 : i32
    %c0_i32_0 = arith.constant 0 : i32
    %c0_i32_1 = arith.constant 0 : i32
    return %arg0, %c0_i32, %c0_i32_0 : i32, i32, i32
  }
  func.func @transform_1(%arg0: i32) -> (i32, i32, i32) {
    %c0_i32 = arith.constant 0 : i32
    %c0_i32_0 = arith.constant 0 : i32
    %c0_i32_1 = arith.constant 0 : i32
    return %arg0, %c0_i32, %c0_i32_0 : i32, i32, i32
  }
  func.func @transform_2(%arg0: i32) -> (i32, i32) {
    %c0_i32 = arith.constant 0 : i32
    %c0_i32_0 = arith.constant 0 : i32
    %c0_i32_1 = arith.constant 0 : i32
    return %c0_i32, %c0_i32_0 : i32, i32
  }
  func.func @transform_3(%arg0: i32) -> (i32, i32) {
    %c0_i32 = arith.constant 0 : i32
    %c0_i32_0 = arith.constant 0 : i32
    %c0_i32_1 = arith.constant 0 : i32
    return %c0_i32, %c0_i32_0 : i32, i32
  }
  func.func @transform_4(%arg0: i32) -> (i32, i32) {
    %c0_i32 = arith.constant 0 : i32
    %c0_i32_0 = arith.constant 0 : i32
    %c0_i32_1 = arith.constant 0 : i32
    return %c0_i32, %c0_i32_0 : i32, i32
  }
  func.func @transform_5(%arg0: i32) -> (i32, i32) {
    %c0_i32 = arith.constant 0 : i32
    %c0_i32_0 = arith.constant 0 : i32
    %c0_i32_1 = arith.constant 0 : i32
    return %c0_i32, %c0_i32_0 : i32, i32
  }
  func.func @transform_6(%arg0: i32) -> (i32, i32, i32) {
    %c0_i32 = arith.constant 0 : i32
    %c0_i32_0 = arith.constant 0 : i32
    %c0_i32_1 = arith.constant 0 : i32
    return %arg0, %c0_i32, %c0_i32_0 : i32, i32, i32
  }
}

</mosaic_0001>

<bundles_post_ra>
// kernel: tpu_custom_call.1
= control target key start
LH: loop header
LB: loop body
LE: loop exit
PB: predicated region body
PF: predicated region fallthrough
CT: control target
= control target key end

     0   :  { %11 = vsyncpa [#allocation3], 0  ;;  %s2378_s0 = inlined_call_operand.vmem [shape: f32[2,4,256], index: 0, kind: input, shape index: {}]   ;;  %s2379_s1 = inlined_call_operand.vmem [shape: f32[2,4,256], index: 1, kind: input, shape index: {}]   ;;  %s2380_s2 = inlined_call_operand.vmem [shape: f32[32,4], index: 2, kind: input, shape index: {}]   ;;  %s2381_s3 = inlined_call_operand.vmem [shape: f32[32,1], index: 3, kind: input, shape index: {}]   ;;  %s2382_s4 = inlined_call_operand.vmem [shape: f32[49,4], index: 4, kind: input, shape index: {}]   ;;  %s2383_s5 = inlined_call_operand.vmem [shape: f32[49,1], index: 5, kind: input, shape index: {}]   ;;  %s2384_s6 = inlined_call_operand.hbm [shape: f32[2,16,256], index: 6, kind: output, shape index: {}]  }
   0x1   :  { %13 = vsyncpa [#allocation3 + $0x1], 0  ;;  %s1846_s21 = smov 0   ;;  %s1848_s22 = smov 0  }
   0x2   :  { %s1850_s23 = smov 0   ;;  %s1852_s24 = smov 0  }
   0x3 LB: > { %s1867_s25 = sadd.s32 4294967295, %s1804_s24   ;;  %s1491_s26 = sadd.s32 4294967294, %s1804_s24   ;;  %s1804_s24 = sphi %s1852_s24, %s2440_s24   ;;  %s1800_s23 = sphi %s1850_s23, %s2439_s23   ;;  %s1796_s22 = sphi %s1848_s22, %s2438_s22   ;;  %s1792_s21 = sphi %s1846_s21, %s2437_s21  }
   0x4   : > { %s1871_s27 = sadd.s32 1, %s1804_s24   ;;  %s162_s28 = sadd.s32 1, %s1800_s23 }
   0x5   : > { %s159_s29 = ssub.s32 %s1804_s24, %s1871_s27  ;;  %p172_p0 = scmp.ne.s32.totalorder %s1800_s23, %s1796_s22 }
   0x6   : > { %p160_p1 = scmp.eq.s32.totalorder %s159_s29, 0  ;;  %p173_p2 = scmp.eq.s32.totalorder %s1867_s25, 1 }
   0x7   : > { %p178_p3 = scmp.ne.s32.totalorder %s1796_s22, %s1792_s21  ;;  %p179_p4 = scmp.eq.s32.totalorder %s1491_s26, 1 }
   0x8   : > { %s1882_s30 = scalar_select %p160_p1, %s1800_s23, %s162_s28  }
   0x9   : > { %p1884_p5 = por %p173_p2, %p172_p0  ;;  %p1888_p6 = por %p179_p4, %p178_p3 }
   0xa   : > { %p1494_p7 = scmp.ge.s32.totalorder %s1804_s24, 1  ;;  %p225_p8 = scmp.lt.s32.totalorder %s1804_s24, 3 }
   0xc   : > { %p226_p9 = pnand %p1494_p7, %p225_p8 }
   0xe   : > { %229 = sbr.rel (%p226_p9) target bundleno = 1174 (0x496), region = 44 }
  0x15   : > { %p260_p10 = scmp.lt.s32.totalorder %s1867_s25, 1  ;;  %v1806_v0 = vmov 0.0   ;;  %v1807_v1 = vmov 0   ;;  %v276_v2 = vld [vmem:[%s2381_s3] sm:$0xff]  ;;  %v278_v3 = vld [vmem:[%s2381_s3 + $0x10] sm:$0xff]  ;;  %v277_v4 = vld [vmem:[%s2381_s3 + $0x8] sm:$0xff] }
  0x16   : > { %384 = vmatprep.mubr.f32.mxu0 %v1806_v0  ;;  %549 = vmatprep.mubr.f32.mxu1 %v1806_v0  ;;  %v279_v5 = vld [vmem:[%s2381_s3 + $0x18] sm:$0xff]  ;;  %vm315_vm0 = vcmask 1043456   ;;  %v272_v10 = vld [vmem:[%s2380_s2] sm:$0xff]  ;;  %vm302_vm1 = vcmask 31744   ;;  %v417_v13 = vld [vmem:[%s2383_s5 + $0x8] sm:$0xff]  ;;  %vm656_vm2 = vcmask 261120  }
  0x17   : > { %s261_s9 = scalar_select %p260_p10, %s1867_s25, 1  ;;  %1606 = vset.pattern.permute.xlu0 %v1807_v1  ;;  %1607 = vset.pattern.permute.xlu1 %v1807_v1  ;;  %v409_v11 = vld [vmem:[%s2382_s4] sm:$0xff]  ;;  %v273_v14 = vld [vmem:[%s2380_s2 + $0x8] sm:$0xff]  ;;  %v418_v16 = vld [vmem:[%s2383_s5 + $0x10] sm:$0xff] }
  0x18   : > { %282 = vperm.xlu0 %1606, %v276_v2   ;;  %292 = vperm.xlu1 %1607, %v278_v3   ;;  %v416_v12 = vld [vmem:[%s2383_s5] sm:$0xff]  ;;  %v410_v15 = vld [vmem:[%s2382_s4 + $0x8] sm:$0xff]  ;;  %v419_v17 = vld [vmem:[%s2383_s5 + $0x18] sm:$0xff]  ;;  %s257_s16 = sand.u32 1, %s1796_s22   ;;  %s1554_s18 = sshll.u32 %s1867_s25, 9 }
  0x19   : > { %s1552_s14 = sshll.u32 %s261_s9, 3  ;;  %v274_v18 = vld [vmem:[%s2380_s2 + $0x10] sm:$0xff]  ;;  %v275_v20 = vld [vmem:[%s2380_s2 + $0x18] sm:$0xff]  ;;  %s2333_s29 = scalar_lea.hbm %s2384_s6, %s1554_s18 }
  0x1a   : > { %s264_s17 = scalar_lea.vmem %s2378_s0, %s1552_s14  ;;  %s269_s20 = scalar_lea.vmem %s2379_s1, %s1552_s14  ;;  %v411_v19 = vld [vmem:[%s2382_s4 + $0x10] sm:$0xff]  ;;  %v412_v21 = vld [vmem:[%s2382_s4 + $0x18] sm:$0xff] }
  0x1b   : > { %v270_v6 = vld [vmem:[%s264_s17] sm:$0xff]  ;;  %s1495_s17 = sshll.u32 %s257_s16, 5  ;;  %s2337_s25 = scalar_lea.sflag [#allocation3], %s257_s16 }
  0x1c   : > { %v271_v7 = vld [vmem:[%s269_s20] sm:$0xff]  ;;  %v301_v8 = vcombine.high %v270_v6, %v270_v6  ;;  %287 = vperm.xlu0 %1606, %v277_v4   ;;  %297 = vperm.xlu1 %1607, %v279_v5   ;;  %s259_s19 = scalar_lea.vmem [#allocation2], %s1495_s17  ;;  %s1808_s9 = smov [#allocation2]  }
  0x1d   : > { %v459_v9 = vcombine.high %v271_v7, %v271_v7  ;;  %s1417_s20 = sshll.u32 %s259_s19, 4  ;;  %s1746_s11 = sshll.u32 %s1808_s9, 4  ;;  %s2335_s20 = int_to_ptr.vmem [resolvable:$true] %s1417_s20  ;;  %s1747_s11 = int_to_ptr.vmem [resolvable:$false] %s1746_s11 }
  0x1e   : > { %1500 = vmatprep.subr.msk.mxu0 %vm315_vm0, %v301_v8  ;;  %s1742_s10 = scalar_lea.vmem %s2335_s20, 512  ;;  %s1748_s12 = scalar_lea.vmem %s1747_s11, 1024 }
  0x1f   : > { %1506 = vmatprep.subr.msk.mxu1 %vm315_vm0, %v459_v9  ;;  %1501 = vmatpush1.msk.msra.mxu0 %vm315_vm0, %v270_v6  ;;  %p1743_p11 = scmp.ne.s32.totalorder %s2335_s20, %s1742_s10  ;;  %p1749_p0 = scmp.lt.s32.totalorder %s2335_s20, %s1747_s11 }
  0x20   : > { %1507 = vmatpush1.msk.msra.mxu1 %vm315_vm0, %v271_v7  ;;  %1502 = vmatmul.mubr.msk.f32.vlgmr.msra.gmra.mrb[0].mxu0 %vm302_vm1, %v272_v10  ;;  %p1750_p1 = scmp.lt.s32.totalorder %s1748_s12, %s1742_s10 }
  0x21   : > { %1508 = vmatmul.mubr.msk.f32.vlgmr.msra.gmra.mrb[0].mxu1 %vm302_vm1, %v409_v11  ;;  %390 = vmatprep.mubr.f32.mxu0 %v1806_v0  ;;  %p1744_p12 = pnand %p1743_p11, %p1884_p5 }
  0x22   : > { %555 = vmatprep.mubr.f32.mxu1 %v1806_v0  ;;  %425 = vperm.xlu0 %1606, %v416_v12   ;;  %p1751_p2 = por %p1750_p1, %p1749_p0 }
  0x23   : > { %430 = vperm.xlu1 %1607, %v417_v13   ;;  %p1745_p13 = pneg %p1744_p12 }
  0x24   : > { %1503 = vmatmul.mubr.msk.f32.gmra.mrb[2].mxu0 %vm302_vm1, %v273_v14 }
  0x25   : > { %1509 = vmatmul.mubr.msk.f32.gmra.mrb[2].mxu1 %vm302_vm1, %v410_v15  ;;  %396 = vmatprep.mubr.f32.mxu0 %v1806_v0  ;;  %p1752_p3 = pnand %p1751_p2, %p1745_p13 }
  0x26   : > { %561 = vmatprep.mubr.f32.mxu1 %v1806_v0  ;;  %435 = vperm.xlu0 %1606, %v418_v16  }
  0x27   : > { %440 = vperm.xlu1 %1607, %v419_v17  }
  0x28   : > { %1504 = vmatmul.mubr.msk.f32.gmra.mrb[4].mxu0 %vm302_vm1, %v274_v18 }
  0x29   : > { %1510 = vmatmul.mubr.msk.f32.gmra.mrb[4].mxu1 %vm302_vm1, %v411_v19  ;;  %402 = vmatprep.mubr.f32.mxu0 %v1806_v0 }
  0x2a   : > { %567 = vmatprep.mubr.f32.mxu1 %v1806_v0 }
  0x2c   : > { %1505 = vmatmul.mubr.msk.f32.gmra.mrb[6].mxu0 %vm302_vm1, %v275_v20 }
  0x2d   : > { %1511 = vmatmul.mubr.msk.f32.gmra.mrb[6].mxu1 %vm302_vm1, %v412_v21  ;;  %817 = vmatprep.mubr.f32.mxu0 %v1806_v0 }
  0x2e   : > { %573 = vmatprep.mubr.f32.mxu1 %v1806_v0 }
  0x97   : > { %v293_v22 = vpop.permute.xlu1 %292  ;;  %v283_v23 = vpop.permute.xlu0 %282 }
  0x9b   : > { %v298_v24 = vpop.permute.xlu1 %297  ;;  %v288_v25 = vpop.permute.xlu0 %287 }
  0xa1   : > { %v426_v33 = vpop.permute.xlu0 %425 }
  0xa2   : > { %v431_v32 = vpop.permute.xlu1 %430 }
  0xa5   : > { %v436_v52 = vpop.permute.xlu0 %435 }
  0xa6   : > { %v441_v53 = vpop.permute.xlu1 %440 }
  0xf3   : > { %v386_v26 = vpop.f32.mrb[0].mxu0 }
  0xf4   : > { %v551_v27 = vpop.f32.mrb[0].mxu1  ;;  %v387_v28 = vadd.f32 %v386_v26, %v283_v23  ;;  %v388_v29 = vpop.f32.mrb[1].mxu0 }
  0xf5   : > { %v553_v30 = vpop.f32.mrb[1].mxu1  ;;  %v389_v31 = vadd.f32 %v388_v29, %v283_v23  ;;  %v552_v36 = vadd.f32 %v551_v27, %v426_v33 }
  0xf6   : > { %592 = vxpose.xlu0.b32.start [1/4] (short) %v387_v28, 128  ;;  %v554_v41 = vadd.f32 %v553_v30, %v426_v33 }
  0xf7   : > { %v392_v34 = vpop.f32.mrb[2].mxu0  ;;  %624 = vxpose.xlu1.b32.start [1/4] (short) %v389_v31, 128 }
  0xf8   : > { %v557_v35 = vpop.f32.mrb[2].mxu1  ;;  %v393_v37 = vadd.f32 %v392_v34, %v288_v25  ;;  %v394_v39 = vpop.f32.mrb[3].mxu0 }
  0xf9   : > { %v558_v38 = vadd.f32 %v557_v35, %v431_v32  ;;  %v559_v40 = vpop.f32.mrb[3].mxu1  ;;  %v395_v42 = vadd.f32 %v394_v39, %v288_v25  ;;  %v413_v35 = vld [vmem:[%s2382_s4 + $0x20] sm:$0xff] }
  0xfa   : > { %v560_v43 = vadd.f32 %v559_v40, %v431_v32  ;;  %593 = vxpose.xlu0.b32.cont [2/4] (short) %v393_v37, 128  ;;  %1512 = vmatmul.mubr.msk.f32.gmra.mrb[8].mxu1 %vm302_vm1, %v413_v35  ;;  %v415_v37 = vld [vmem:[%s2382_s4 + $0x30] sm:$0x1] }
  0xfb   : > { %v1557_v44 = vpack.c.bf16 %v558_v38, %v552_v36  ;;  %v398_v46 = vpop.f32.mrb[4].mxu0  ;;  %625 = vxpose.xlu1.b32.cont [2/4] (short) %v395_v42, 128  ;;  %579 = vmatprep.mubr.f32.mxu1 %v1806_v0  ;;  %v414_v36 = vld [vmem:[%s2382_s4 + $0x28] sm:$0xff] }
  0xfc   : > { %v1555_v45 = vpack.c.bf16 %v560_v43, %v554_v41  ;;  %v563_v47 = vpop.f32.mrb[4].mxu1  ;;  %v399_v48 = vadd.f32 %v398_v46, %v293_v22  ;;  %v400_v49 = vpop.f32.mrb[5].mxu0 }
  0xfd   : > { %v565_v50 = vpop.f32.mrb[5].mxu1  ;;  %v401_v51 = vadd.f32 %v400_v49, %v293_v22  ;;  %v564_v56 = vadd.f32 %v563_v47, %v436_v52 }
  0xfe   : > { %1556 = vmatprep.subr.bf16.mxu0 %v1555_v45  ;;  %594 = vxpose.xlu0.b32.cont [3/4] (short) %v399_v48, 128  ;;  %v566_v61 = vadd.f32 %v565_v50, %v436_v52 }
  0xff   : > { %1558 = vmatpush1.bf16.msra.mxu0 %v1557_v44  ;;  %v404_v54 = vpop.f32.mrb[6].mxu0  ;;  %626 = vxpose.xlu1.b32.cont [3/4] (short) %v401_v51, 128 }
 0x100   : > { %v569_v55 = vpop.f32.mrb[6].mxu1  ;;  %v405_v57 = vadd.f32 %v404_v54, %v298_v24  ;;  %v406_v59 = vpop.f32.mrb[7].mxu0  ;;  %1513 = vmatmul.mubr.msk.f32.gmra.mrb[10].mxu1 %vm302_vm1, %v414_v36 }
 0x101   : > { %v570_v58 = vadd.f32 %v569_v55, %v441_v53  ;;  %v571_v60 = vpop.f32.mrb[7].mxu1  ;;  %v407_v62 = vadd.f32 %v406_v59, %v298_v24  ;;  %585 = vmatprep.mubr.f32.mxu1 %v1806_v0 }
 0x102   : > { %v572_v63 = vadd.f32 %v571_v60, %v441_v53  ;;  %595 = vxpose.xlu0.b32.end [4/4] (short) %v405_v57, 128 }
 0x103   : > { %v1561_v1 = vpack.c.bf16 %v570_v58, %v564_v56  ;;  %627 = vxpose.xlu1.b32.end [4/4] (short) %v407_v62, 128 }
 0x104   : > { %v1559_v2 = vpack.c.bf16 %v572_v63, %v566_v61  ;;  %1514 = vmatmul.mubr.msk.f32.gmra.mrb[12].mxu1 %vm302_vm1, %v415_v37 }
 0x106   : > { %1560 = vmatprep.subr.bf16.mxu0 %v1559_v2 }
 0x107   : > { %1562 = vmatpush1.bf16.msra.mxu0 %v1561_v1 }
 0x176   : > { %v608_v3 = vpop.trf.xlu0 }
 0x177   : > { %1515 = vmatmul.mubr.msk.f32.vlgmr.msra.gmra.mrb[8].mxu0 %vm656_vm2, %v608_v3  ;;  %v640_v12 = vpop.trf.xlu1 }
 0x178   : > { %823 = vmatprep.mubr.f32.mxu0 %v1806_v0 }
 0x17a   : > { %v609_v4 = vpop.trf.xlu0 }
 0x17b   : > { %1516 = vmatmul.mubr.msk.f32.gmra.mrb[10].mxu0 %vm656_vm2, %v609_v4  ;;  %v641_v14 = vpop.trf.xlu1 }
 0x17c   : > { %829 = vmatprep.mubr.f32.mxu0 %v1806_v0 }
 0x17e   : > { %v610_v5 = vpop.trf.xlu0 }
 0x17f   : > { %1517 = vmatmul.mubr.msk.f32.gmra.mrb[12].mxu0 %vm656_vm2, %v610_v5  ;;  %v642_v17 = vpop.trf.xlu1 }
 0x180   : > { %835 = vmatprep.mubr.f32.mxu0 %v1806_v0 }
 0x182   : > { %v611_v6 = vpop.trf.xlu0 }
 0x183   : > { %1518 = vmatmul.mubr.msk.f32.gmra.mrb[14].mxu0 %vm656_vm2, %v611_v6  ;;  %v643_v19 = vpop.trf.xlu1 }
 0x184   : > { %841 = vmatprep.mubr.f32.mxu0 %v1806_v0 }
 0x186   : > { %v612_v7 = vpop.trf.xlu0 }
 0x187   : > { %1519 = vmatmul.mubr.msk.f32.gmra.mrb[16].mxu0 %vm656_vm2, %v612_v7  ;;  %v644_v22 = vpop.trf.xlu1 }
 0x188   : > { %847 = vmatprep.mubr.f32.mxu0 %v1806_v0 }
 0x18a   : > { %v613_v8 = vpop.trf.xlu0 }
 0x18b   : > { %1520 = vmatmul.mubr.msk.f32.gmra.mrb[18].mxu0 %vm656_vm2, %v613_v8  ;;  %v645_v24 = vpop.trf.xlu1 }
 0x18c   : > { %853 = vmatprep.mubr.f32.mxu0 %v1806_v0 }
 0x18e   : > { %v614_v9 = vpop.trf.xlu0 }
 0x18f   : > { %1521 = vmatmul.mubr.msk.f32.gmra.mrb[20].mxu0 %vm656_vm2, %v614_v9  ;;  %v646_v25 = vpop.trf.xlu1 }
 0x190   : > { %859 = vmatprep.mubr.f32.mxu0 %v1806_v0 }
 0x192   : > { %v615_v10 = vpop.trf.xlu0 }
 0x193   : > { %1522 = vmatmul.mubr.msk.f32.gmra.mrb[22].mxu0 %vm656_vm2, %v615_v10  ;;  %v647_v26 = vpop.trf.xlu1 }
 0x194   : > { %865 = vmatprep.mubr.f32.mxu0 %v1806_v0 }
 0x196   : > { %v616_v11 = vpop.trf.xlu0 }
 0x197   : > { %1523 = vmatmul.mubr.msk.f32.gmra.mrb[24].mxu0 %vm656_vm2, %v616_v11  ;;  %v648_v27 = vpop.trf.xlu1 }
 0x198   : > { %871 = vmatprep.mubr.f32.mxu0 %v1806_v0 }
 0x19a   : > { %v617_v13 = vpop.trf.xlu0 }
 0x19b   : > { %1524 = vmatmul.mubr.msk.f32.gmra.mrb[26].mxu0 %vm656_vm2, %v617_v13  ;;  %v649_v28 = vpop.trf.xlu1 }
 0x19c   : > { %877 = vmatprep.mubr.f32.mxu0 %v1806_v0 }
 0x19e   : > { %v618_v15 = vpop.trf.xlu0 }
 0x19f   : > { %1525 = vmatmul.mubr.msk.f32.gmra.mrb[28].mxu0 %vm656_vm2, %v618_v15  ;;  %v650_v29 = vpop.trf.xlu1 }
 0x1a0   : > { %883 = vmatprep.mubr.f32.mxu0 %v1806_v0 }
 0x1a2   : > { %v619_v16 = vpop.trf.xlu0 }
 0x1a3   : > { %1526 = vmatmul.mubr.msk.f32.gmra.mrb[30].mxu0 %vm656_vm2, %v619_v16  ;;  %v651_v30 = vpop.trf.xlu1 }
 0x1a4   : > { %889 = vmatprep.mubr.f32.mxu0 %v1806_v0 }
 0x1a6   : > { %v620_v18 = vpop.trf.xlu0 }
 0x1a7   : > { %1527 = vmatmul.mubr.msk.f32.gmra.mrb[32].mxu0 %vm656_vm2, %v620_v18  ;;  %v652_v31 = vpop.trf.xlu1 }
 0x1a8   : > { %895 = vmatprep.mubr.f32.mxu0 %v1806_v0 }
 0x1aa   : > { %v621_v20 = vpop.trf.xlu0 }
 0x1ab   : > { %1528 = vmatmul.mubr.msk.f32.gmra.mrb[34].mxu0 %vm656_vm2, %v621_v20  ;;  %v653_v32 = vpop.trf.xlu1 }
 0x1ac   : > { %901 = vmatprep.mubr.f32.mxu0 %v1806_v0 }
 0x1ae   : > { %v622_v21 = vpop.trf.xlu0 }
 0x1af   : > { %1529 = vmatmul.mubr.msk.f32.gmra.mrb[36].mxu0 %vm656_vm2, %v622_v21  ;;  %v654_v33 = vpop.trf.xlu1 }
 0x1b0   : > { %907 = vmatprep.mubr.f32.mxu0 %v1806_v0 }
 0x1b2   : > { %v623_v23 = vpop.trf.xlu0 }
 0x1b3   : > { %1530 = vmatmul.mubr.msk.f32.gmra.mrb[38].mxu0 %vm656_vm2, %v623_v23  ;;  %v655_v34 = vpop.trf.xlu1 }
 0x1b4   : > { %913 = vmatprep.mubr.f32.mxu0 %v1806_v0 }
 0x1b7   : > { %1531 = vmatmul.mubr.msk.f32.gmra.mrb[40].mxu0 %vm656_vm2, %v640_v12 }
 0x1b8   : > { %919 = vmatprep.mubr.f32.mxu0 %v1806_v0 }
 0x1bb   : > { %1532 = vmatmul.mubr.msk.f32.gmra.mrb[42].mxu0 %vm656_vm2, %v641_v14 }
 0x1bc   : > { %925 = vmatprep.mubr.f32.mxu0 %v1806_v0 }
 0x1bf   : > { %1533 = vmatmul.mubr.msk.f32.gmra.mrb[44].mxu0 %vm656_vm2, %v642_v17 }
 0x1c0   : > { %931 = vmatprep.mubr.f32.mxu0 %v1806_v0 }
 0x1c3   : > { %1534 = vmatmul.mubr.msk.f32.gmra.mrb[46].mxu0 %vm656_vm2, %v643_v19 }
 0x1c4   : > { %937 = vmatprep.mubr.f32.mxu0 %v1806_v0 }
 0x1c7   : > { %1535 = vmatmul.mubr.msk.f32.gmra.mrb[48].mxu0 %vm656_vm2, %v644_v22 }
 0x1c8   : > { %943 = vmatprep.mubr.f32.mxu0 %v1806_v0 }
 0x1cb   : > { %1536 = vmatmul.mubr.msk.f32.gmra.mrb[50].mxu0 %vm656_vm2, %v645_v24 }
 0x1cc   : > { %949 = vmatprep.mubr.f32.mxu0 %v1806_v0 }
 0x1cf   : > { %1537 = vmatmul.mubr.msk.f32.gmra.mrb[52].mxu0 %vm656_vm2, %v646_v25 }
 0x1d0   : > { %955 = vmatprep.mubr.f32.mxu0 %v1806_v0 }
 0x1d3   : > { %1538 = vmatmul.mubr.msk.f32.gmra.mrb[54].mxu0 %vm656_vm2, %v647_v26 }
 0x1d4   : > { %961 = vmatprep.mubr.f32.mxu0 %v1806_v0 }
 0x1d7   : > { %1539 = vmatmul.mubr.msk.f32.gmra.mrb[56].mxu0 %vm656_vm2, %v648_v27 }
 0x1d8   : > { %967 = vmatprep.mubr.f32.mxu0 %v1806_v0 }
 0x1db   : > { %1540 = vmatmul.mubr.msk.f32.gmra.mrb[58].mxu0 %vm656_vm2, %v649_v28 }
 0x1dc   : > { %973 = vmatprep.mubr.f32.mxu0 %v1806_v0 }
 0x1df   : > { %1541 = vmatmul.mubr.msk.f32.gmra.mrb[60].mxu0 %vm656_vm2, %v650_v29 }
 0x1e0   : > { %979 = vmatprep.mubr.f32.mxu0 %v1806_v0 }
 0x1e3   : > { %1542 = vmatmul.mubr.msk.f32.gmra.mrb[62].mxu0 %vm656_vm2, %v651_v30 }
 0x1e4   : > { %985 = vmatprep.mubr.f32.mxu0 %v1806_v0 }
 0x1e7   : > { %1543 = vmatmul.mubr.msk.f32.gmra.mrb[64].mxu0 %vm656_vm2, %v652_v31 }
 0x1e8   : > { %991 = vmatprep.mubr.f32.mxu0 %v1806_v0 }
 0x1eb   : > { %1544 = vmatmul.mubr.msk.f32.gmra.mrb[66].mxu0 %vm656_vm2, %v653_v32 }
 0x1ec   : > { %997 = vmatprep.mubr.f32.mxu0 %v1806_v0 }
 0x1ef   : > { %1545 = vmatmul.mubr.msk.f32.gmra.mrb[68].mxu0 %vm656_vm2, %v654_v33 }
 0x1f0   : > { %1003 = vmatprep.mubr.f32.mxu0 %v1806_v0 }
 0x1f3   : > { %1546 = vmatmul.mubr.msk.f32.gmra.mrb[70].mxu0 %vm656_vm2, %v655_v34 }
 0x24a   : > { %v2045_v38 = vpop.f32.mrb[8].mxu0 }
 0x24b   : > { %v2047_v39 = vpop.f32.mrb[9].mxu0 }
 0x24c   : > { %v1010_v40 = vmax.f32 %v2045_v38, %v2047_v39 }
 0x24e   : > { %1011 = vmax.xlane.f32.xlu0 %v1010_v40  ;;  %v2051_v41 = vpop.f32.mrb[10].mxu0 }
 0x24f   : > { %v2053_v42 = vpop.f32.mrb[11].mxu0 }
 0x250   : > { %v1013_v0 = vmax.f32 %v2051_v41, %v2053_v42 }
 0x252   : > { %1014 = vmax.xlane.f32.xlu1 %v1013_v0  ;;  %v2057_v43 = vpop.f32.mrb[12].mxu0 }
 0x253   : > { %v2059_v44 = vpop.f32.mrb[13].mxu0 }
 0x254   : > { %v1016_v45 = vmax.f32 %v2057_v43, %v2059_v44 }
 0x256   : > { %1017 = vmax.xlane.f32.xlu0 %v1016_v45  ;;  %v2063_v46 = vpop.f32.mrb[14].mxu0 }
 0x257   : > { %v2065_v47 = vpop.f32.mrb[15].mxu0 }
 0x258   : > { %v1019_v48 = vmax.f32 %v2063_v46, %v2065_v47 }
 0x25a   : > { %1020 = vmax.xlane.f32.xlu0 %v1019_v48  ;;  %v2069_v49 = vpop.f32.mrb[16].mxu0 }
 0x25b   : > { %v2071_v50 = vpop.f32.mrb[17].mxu0 }
 0x25c   : > { %v1022_v51 = vmax.f32 %v2069_v49, %v2071_v50 }
 0x25e   : > { %1023 = vmax.xlane.f32.xlu1 %v1022_v51  ;;  %v2075_v52 = vpop.f32.mrb[18].mxu0 }
 0x25f   : > { %v2077_v53 = vpop.f32.mrb[19].mxu0 }
 0x260   : > { %v1025_v54 = vmax.f32 %v2075_v52, %v2077_v53 }
 0x262   : > { %1026 = vmax.xlane.f32.xlu0 %v1025_v54  ;;  %v2081_v55 = vpop.f32.mrb[20].mxu0 }
 0x263   : > { %v2083_v56 = vpop.f32.mrb[21].mxu0 }
 0x264   : > { %v1028_v57 = vmax.f32 %v2081_v55, %v2083_v56 }
 0x266   : > { %1029 = vmax.xlane.f32.xlu1 %v1028_v57  ;;  %v2087_v58 = vpop.f32.mrb[22].mxu0 }
 0x267   : > { %v2089_v59 = vpop.f32.mrb[23].mxu0 }
 0x268   : > { %v1031_v60 = vmax.f32 %v2087_v58, %v2089_v59 }
 0x26a   : > { %1032 = vmax.xlane.f32.xlu0 %v1031_v60  ;;  %v2093_v61 = vpop.f32.mrb[24].mxu0 }
 0x26b   : > { %v2095_v62 = vpop.f32.mrb[25].mxu0 }
 0x26c   : > { %v1034_v63 = vmax.f32 %v2093_v61, %v2095_v62 }
 0x26e   : > { %1035 = vmax.xlane.f32.xlu1 %v1034_v63  ;;  %v2099_v1 = vpop.f32.mrb[26].mxu0 }
 0x26f   : > { %v2101_v2 = vpop.f32.mrb[27].mxu0 }
 0x270   : > { %v1037_v3 = vmax.f32 %v2099_v1, %v2101_v2 }
 0x272   : > { %1038 = vmax.xlane.f32.xlu0 %v1037_v3  ;;  %v2105_v4 = vpop.f32.mrb[28].mxu0 }
 0x273   : > { %v2107_v5 = vpop.f32.mrb[29].mxu0 }
 0x274   : > { %v1040_v6 = vmax.f32 %v2105_v4, %v2107_v5 }
 0x276   : > { %1041 = vmax.xlane.f32.xlu1 %v1040_v6  ;;  %v2111_v7 = vpop.f32.mrb[30].mxu0 }
 0x277   : > { %v2113_v8 = vpop.f32.mrb[31].mxu0 }
 0x278   : > { %v1043_v9 = vmax.f32 %v2111_v7, %v2113_v8 }
 0x27a   : > { %1044 = vmax.xlane.f32.xlu0 %v1043_v9  ;;  %v2117_v10 = vpop.f32.mrb[32].mxu0 }
 0x27b   : > { %v2119_v11 = vpop.f32.mrb[33].mxu0 }
 0x27c   : > { %v1046_v12 = vmax.f32 %v2117_v10, %v2119_v11 }
 0x27e   : > { %1047 = vmax.xlane.f32.xlu1 %v1046_v12  ;;  %v2123_v13 = vpop.f32.mrb[34].mxu0 }
 0x27f   : > { %v2125_v14 = vpop.f32.mrb[35].mxu0 }
 0x280   : > { %v1049_v15 = vmax.f32 %v2123_v13, %v2125_v14 }
 0x282   : > { %1050 = vmax.xlane.f32.xlu0 %v1049_v15  ;;  %v2129_v16 = vpop.f32.mrb[36].mxu0 }
 0x283   : > { %v2131_v17 = vpop.f32.mrb[37].mxu0 }
 0x284   : > { %v1052_v18 = vmax.f32 %v2129_v16, %v2131_v17 }
 0x286   : > { %1053 = vmax.xlane.f32.xlu1 %v1052_v18  ;;  %v2135_v19 = vpop.f32.mrb[38].mxu0 }
 0x287   : > { %v2137_v20 = vpop.f32.mrb[39].mxu0 }
 0x288   : > { %v1055_v21 = vmax.f32 %v2135_v19, %v2137_v20 }
 0x28a   : > { %1056 = vmax.xlane.f32.xlu0 %v1055_v21  ;;  %v2141_v22 = vpop.f32.mrb[40].mxu0 }
 0x28b   : > { %v2143_v23 = vpop.f32.mrb[41].mxu0 }
 0x28c   : > { %v1058_v24 = vmax.f32 %v2141_v22, %v2143_v23 }
 0x28e   : > { %1059 = vmax.xlane.f32.xlu1 %v1058_v24  ;;  %v2147_v25 = vpop.f32.mrb[42].mxu0 }
 0x28f   : > { %v2149_v26 = vpop.f32.mrb[43].mxu0 }
 0x290   : > { %v1061_v27 = vmax.f32 %v2147_v25, %v2149_v26 }
 0x292   : > { %1062 = vmax.xlane.f32.xlu0 %v1061_v27  ;;  %v2153_v28 = vpop.f32.mrb[44].mxu0 }
 0x293   : > { %v2155_v29 = vpop.f32.mrb[45].mxu0 }
 0x294   : > { %v1064_v30 = vmax.f32 %v2153_v28, %v2155_v29 }
 0x296   : > { %1065 = vmax.xlane.f32.xlu1 %v1064_v30  ;;  %v2159_v31 = vpop.f32.mrb[46].mxu0 }
 0x297   : > { %v2161_v32 = vpop.f32.mrb[47].mxu0 }
 0x298   : > { %v1067_v33 = vmax.f32 %v2159_v31, %v2161_v32 }
 0x29a   : > { %1068 = vmax.xlane.f32.xlu0 %v1067_v33  ;;  %v2165_v34 = vpop.f32.mrb[48].mxu0 }
 0x29b   : > { %v2167_v35 = vpop.f32.mrb[49].mxu0 }
 0x29c   : > { %v1070_v36 = vmax.f32 %v2165_v34, %v2167_v35 }
 0x29e   : > { %1071 = vmax.xlane.f32.xlu1 %v1070_v36  ;;  %v2171_v37 = vpop.f32.mrb[50].mxu0 }
 0x29f   : > { %v2173_v40 = vpop.f32.mrb[51].mxu0 }
 0x2a0   : > { %v1073_v0 = vmax.f32 %v2171_v37, %v2173_v40 }
 0x2a2   : > { %1074 = vmax.xlane.f32.xlu0 %v1073_v0  ;;  %v2177_v45 = vpop.f32.mrb[52].mxu0 }
 0x2a3   : > { %v2179_v48 = vpop.f32.mrb[53].mxu0 }
 0x2a4   : > { %v1076_v51 = vmax.f32 %v2177_v45, %v2179_v48 }
 0x2a6   : > { %1077 = vmax.xlane.f32.xlu1 %v1076_v51  ;;  %v2183_v54 = vpop.f32.mrb[54].mxu0 }
 0x2a7   : > { %v2185_v57 = vpop.f32.mrb[55].mxu0 }
 0x2a8   : > { %v1079_v60 = vmax.f32 %v2183_v54, %v2185_v57 }
 0x2aa   : > { %1080 = vmax.xlane.f32.xlu0 %v1079_v60  ;;  %v2189_v63 = vpop.f32.mrb[56].mxu0 }
 0x2ab   : > { %v2191_v3 = vpop.f32.mrb[57].mxu0 }
 0x2ac   : > { %v1082_v6 = vmax.f32 %v2189_v63, %v2191_v3 }
 0x2ae   : > { %1083 = vmax.xlane.f32.xlu1 %v1082_v6  ;;  %v2195_v9 = vpop.f32.mrb[58].mxu0 }
 0x2af   : > { %2401 = vst [vmem:[#allocation5_spill] sm:$0xff] %v2195_v9  ;;  %v2197_v12 = vpop.f32.mrb[59].mxu0 }
 0x2b0   : > { %2402 = vst [vmem:[#allocation6_spill] sm:$0xff] %v2197_v12  ;;  %v1085_v15 = vmax.f32 %v2195_v9, %v2197_v12 }
 0x2b2   : > { %1086 = vmax.xlane.f32.xlu0 %v1085_v15  ;;  %v2201_v18 = vpop.f32.mrb[60].mxu0 }
 0x2b3   : > { %2403 = vst [vmem:[#allocation7_spill] sm:$0xff] %v2201_v18  ;;  %v2203_v21 = vpop.f32.mrb[61].mxu0 }
 0x2b4   : > { %2404 = vst [vmem:[#allocation8_spill] sm:$0xff] %v2203_v21  ;;  %v1088_v24 = vmax.f32 %v2201_v18, %v2203_v21 }
 0x2b6   : > { %1089 = vmax.xlane.f32.xlu1 %v1088_v24  ;;  %v2207_v27 = vpop.f32.mrb[62].mxu0 }
 0x2b7   : > { %2405 = vst [vmem:[#allocation9_spill] sm:$0xff] %v2207_v27  ;;  %v2209_v30 = vpop.f32.mrb[63].mxu0 }
 0x2b8   : > { %2406 = vst [vmem:[#allocation10_spill] sm:$0xff] %v2209_v30  ;;  %v1091_v33 = vmax.f32 %v2207_v27, %v2209_v30 }
 0x2ba   : > { %1092 = vmax.xlane.f32.xlu0 %v1091_v33  ;;  %v2213_v36 = vpop.f32.mrb[64].mxu0 }
 0x2bb   : > { %2407 = vst [vmem:[#allocation11_spill] sm:$0xff] %v2213_v36  ;;  %v2215_v0 = vpop.f32.mrb[65].mxu0 }
 0x2bc   : > { %2408 = vst [vmem:[#allocation12_spill] sm:$0xff] %v2215_v0  ;;  %v1094_v51 = vmax.f32 %v2213_v36, %v2215_v0  ;;  %v421_v36 = vld [vmem:[%s2383_s5 + $0x28] sm:$0xff] }
 0x2be   : > { %1095 = vmax.xlane.f32.xlu1 %v1094_v51  ;;  %v2219_v60 = vpop.f32.mrb[66].mxu0 }
 0x2bf   : > { %2409 = vst [vmem:[#allocation13_spill] sm:$0xff] %v2219_v60  ;;  %v2221_v6 = vpop.f32.mrb[67].mxu0 }
 0x2c0   : > { %2410 = vst [vmem:[#allocation14_spill] sm:$0xff] %v2221_v6  ;;  %v1097_v15 = vmax.f32 %v2219_v60, %v2221_v6  ;;  %v420_v6 = vld [vmem:[%s2383_s5 + $0x20] sm:$0xff] }
 0x2c2   : > { %1098 = vmax.xlane.f32.xlu0 %v1097_v15  ;;  %v2225_v24 = vpop.f32.mrb[68].mxu0  ;;  %v2240_v15 = vpop.f32.mrb[8].mxu1 }
 0x2c3   : > { %2411 = vst [vmem:[#allocation15_spill] sm:$0xff] %v2225_v24  ;;  %v2227_v30 = vpop.f32.mrb[69].mxu0  ;;  %2415 = vst [vmem:[#allocation19_spill] sm:$0xff] %v2240_v15  ;;  %v2242_v60 = vpop.f32.mrb[9].mxu1 }
 0x2c4   : > { %2412 = vst [vmem:[#allocation16_spill] sm:$0xff] %v2227_v30  ;;  %v1100_v33 = vmax.f32 %v2225_v24, %v2227_v30  ;;  %2416 = vst [vmem:[#allocation20_spill] sm:$0xff] %v2242_v60 }
 0x2c6   : > { %v2231_v27 = vpop.f32.mrb[70].mxu0 }
 0x2c7   : > { %2413 = vst [vmem:[#allocation17_spill] sm:$0xff] %v2231_v27  ;;  %v2233_v21 = vpop.f32.mrb[71].mxu0 }
 0x2c8   : > { %2414 = vst [vmem:[#allocation18_spill] sm:$0xff] %v2233_v21  ;;  %v1103_v51 = vmax.f32 %v2231_v27, %v2233_v21 }
 0x2ca   : > { %1104 = vmax.xlane.f32.xlu0 %v1103_v51  ;;  %v2249_v51 = vpop.f32.mrb[10].mxu1 }
 0x2cb   : > { %2417 = vst [vmem:[#allocation21_spill] sm:$0xff] %v2249_v51  ;;  %v2251_v12 = vpop.f32.mrb[11].mxu1 }
 0x2cc   : > { %2418 = vst [vmem:[#allocation22_spill] sm:$0xff] %v2251_v12 }
 0x2cf   : > { %445 = vperm.xlu1 %1607, %v420_v6  }
 0x2db   : > { %v1012_v0 = vpop.xlane.xlu0 %1011 }
 0x2dc   : > { %v1106_v30 = vsub.f32 %v2045_v38, %v1012_v0  ;;  %v1107_v24 = vsub.f32 %v2047_v39, %v1012_v0 }
 0x2de   : > { %v1170_v21 = vmul.f32 1.442695, %v1106_v30  ;;  %v1172_v27 = vmul.f32 1.442695, %v1107_v24 }
 0x2df   : > { %v1015_v18 = vpop.xlane.xlu1 %1014 }
 0x2e0   : > { %v1108_v6 = vsub.f32 %v2051_v41, %v1015_v18  ;;  %v1109_v60 = vsub.f32 %v2053_v42, %v1015_v18  ;;  %450 = vperm.xlu0 %1606, %v421_v36   ;;  %1610 = vpow2.f32 %v1170_v21 }
 0x2e1   : > { %1612 = vpow2.f32 %v1172_v27 }
 0x2e2   : > { %v1174_v38 = vmul.f32 1.442695, %v1108_v6  ;;  %v1176_v15 = vmul.f32 1.442695, %v1109_v60 }
 0x2e3   : > { %v1018_v39 = vpop.xlane.xlu0 %1017 }
 0x2e4   : > { %1614 = vpow2.f32 %v1174_v38  ;;  %v1110_v0 = vsub.f32 %v2057_v43, %v1018_v39  ;;  %v1111_v30 = vsub.f32 %v2059_v44, %v1018_v39 }
 0x2e5   : > { %1616 = vpow2.f32 %v1176_v15 }
 0x2e6   : > { %v1178_v24 = vmul.f32 1.442695, %v1110_v0  ;;  %v1180_v51 = vmul.f32 1.442695, %v1111_v30 }
 0x2e7   : > { %v1021_v9 = vpop.xlane.xlu0 %1020 }
 0x2e8   : > { %v1112_v12 = vsub.f32 %v2063_v46, %v1021_v9  ;;  %v1113_v41 = vsub.f32 %v2065_v47, %v1021_v9  ;;  %1618 = vpow2.f32 %v1178_v24 }
 0x2e9   : > { %1620 = vpow2.f32 %v1180_v51 }
 0x2ea   : > { %v1182_v42 = vmul.f32 1.442695, %v1112_v12  ;;  %v1184_v18 = vmul.f32 1.442695, %v1113_v41  ;;  %v1611_v27 = vpop.eup %1610 }
 0x2eb   : > { %v1024_v21 = vpop.xlane.xlu1 %1023  ;;  %v1613_v44 = vpop.eup %1612 }
 0x2ec   : > { %1622 = vpow2.f32 %v1182_v42  ;;  %v1114_v36 = vsub.f32 %v2069_v49, %v1024_v21  ;;  %v1115_v43 = vsub.f32 %v2071_v50, %v1024_v21 }
 0x2ed   : > { %1624 = vpow2.f32 %v1184_v18 }
 0x2ee   : > { %v1615_v60 = vpop.eup %1614  ;;  %v1186_v15 = vmul.f32 1.442695, %v1114_v36  ;;  %v1188_v38 = vmul.f32 1.442695, %v1115_v43 }
 0x2ef   : > { %v1617_v6 = vpop.eup %1616  ;;  %v1027_v46 = vpop.xlane.xlu0 %1026  ;;  %v1302_v39 = vpack.c.bf16 %v1615_v60, %v1611_v27 }
 0x2f0   : > { %v1116_v47 = vsub.f32 %v2075_v52, %v1027_v46  ;;  %v1117_v9 = vsub.f32 %v2077_v53, %v1027_v46  ;;  %v1303_v12 = vpack.c.bf16 %v1617_v6, %v1613_v44  ;;  %1626 = vpow2.f32 %v1186_v15 }
 0x2f1   : > { %1628 = vpow2.f32 %v1188_v38 }
 0x2f2   : > { %v1190_v51 = vmul.f32 1.442695, %v1116_v47  ;;  %v1192_v0 = vmul.f32 1.442695, %v1117_v9  ;;  %1334 = vmatprep.subr.bf16.mxu1 %v1303_v12  ;;  %v1619_v50 = vpop.eup %1618 }
 0x2f3   : > { %1335 = vmatpush1.bf16.xpose.msra.mxu1 %v1302_v39  ;;  %v1030_v49 = vpop.xlane.xlu1 %1029  ;;  %1101 = vmax.xlane.f32.xlu1 %v1100_v33  ;;  %v1621_v41 = vpop.eup %1620 }
 0x2f4   : > { %1630 = vpow2.f32 %v1190_v51  ;;  %v1118_v30 = vsub.f32 %v2081_v55, %v1030_v49  ;;  %v1119_v24 = vsub.f32 %v2083_v56, %v1030_v49  ;;  %v422_v49 = vld [vmem:[%s2383_s5 + $0x30] sm:$0x1] }
 0x2f5   : > { %1632 = vpow2.f32 %v1192_v0 }
 0x2f6   : > { %v1623_v52 = vpop.eup %1622  ;;  %v1194_v42 = vmul.f32 1.442695, %v1118_v30  ;;  %v1196_v18 = vmul.f32 1.442695, %v1119_v24 }
 0x2f7   : > { %v1625_v53 = vpop.eup %1624  ;;  %v1033_v21 = vpop.xlane.xlu0 %1032  ;;  %v1304_v27 = vpack.c.bf16 %v1623_v52, %v1619_v50 }
 0x2f8   : > { %v1120_v36 = vsub.f32 %v2087_v58, %v1033_v21  ;;  %v1121_v43 = vsub.f32 %v2089_v59, %v1033_v21  ;;  %v1305_v44 = vpack.c.bf16 %v1625_v53, %v1621_v41  ;;  %1634 = vpow2.f32 %v1194_v42  ;;  %v2276_v41 = vpop.f32.mrb[12].mxu1 }
 0x2f9   : > { %1636 = vpow2.f32 %v1196_v18  ;;  %v2278_v53 = vpop.f32.mrb[13].mxu1 }
 0x2fa   : > { %v1198_v33 = vmul.f32 1.442695, %v1120_v36  ;;  %v1200_v60 = vmul.f32 1.442695, %v1121_v43  ;;  %1336 = vmatprep.subr.bf16.mxu1 %v1305_v44  ;;  %v1627_v56 = vpop.eup %1626 }
 0x2fb   : > { %1337 = vmatpush1.bf16.xpose.msra.mxu1 %v1304_v27  ;;  %v1036_v55 = vpop.xlane.xlu1 %1035  ;;  %v1629_v38 = vpop.eup %1628 }
 0x2fc   : > { %1638 = vpow2.f32 %v1198_v33  ;;  %v1122_v15 = vsub.f32 %v2093_v61, %v1036_v55  ;;  %v1123_v6 = vsub.f32 %v2095_v62, %v1036_v55 }
 0x2fd   : > { %1640 = vpow2.f32 %v1200_v60 }
 0x2fe   : > { %v1631_v46 = vpop.eup %1630  ;;  %v1202_v58 = vmul.f32 1.442695, %v1122_v15  ;;  %v1204_v59 = vmul.f32 1.442695, %v1123_v6 }
 0x2ff   : > { %v1633_v39 = vpop.eup %1632  ;;  %v1039_v47 = vpop.xlane.xlu0 %1038  ;;  %v1306_v9 = vpack.c.bf16 %v1631_v46, %v1627_v56 }
 0x300   : > { %v1124_v12 = vsub.f32 %v2099_v1, %v1039_v47  ;;  %v1125_v51 = vsub.f32 %v2101_v2, %v1039_v47  ;;  %v1307_v0 = vpack.c.bf16 %v1633_v39, %v1629_v38  ;;  %1642 = vpow2.f32 %v1202_v58 }
 0x301   : > { %1644 = vpow2.f32 %v1204_v59 }
 0x302   : > { %v1206_v61 = vmul.f32 1.442695, %v1124_v12  ;;  %v1208_v62 = vmul.f32 1.442695, %v1125_v51  ;;  %1338 = vmatprep.subr.bf16.mxu1 %v1307_v0  ;;  %v1635_v30 = vpop.eup %1634 }
 0x303   : > { %1339 = vmatpush1.bf16.xpose.msra.mxu1 %v1306_v9  ;;  %v1042_v50 = vpop.xlane.xlu1 %1041  ;;  %v1637_v2 = vpop.eup %1636 }
 0x304   : > { %1646 = vpow2.f32 %v1206_v61  ;;  %v1126_v24 = vsub.f32 %v2105_v4, %v1042_v50  ;;  %v1127_v1 = vsub.f32 %v2107_v5, %v1042_v50  ;;  %455 = vperm.xlu1 %1607, %v422_v49  }
 0x305   : > { %1648 = vpow2.f32 %v1208_v62 }
 0x306   : > { %v1639_v52 = vpop.eup %1638  ;;  %v1210_v42 = vmul.f32 1.442695, %v1126_v24  ;;  %v1212_v21 = vmul.f32 1.442695, %v1127_v1 }
 0x307   : > { %v1641_v18 = vpop.eup %1640  ;;  %v1045_v27 = vpop.xlane.xlu0 %1044  ;;  %v1308_v36 = vpack.c.bf16 %v1639_v52, %v1635_v30 }
 0x308   : > { %v1128_v43 = vsub.f32 %v2111_v7, %v1045_v27  ;;  %v1129_v44 = vsub.f32 %v2113_v8, %v1045_v27  ;;  %v1309_v4 = vpack.c.bf16 %v1641_v18, %v1637_v2  ;;  %1650 = vpow2.f32 %v1210_v42 }
 0x309   : > { %1652 = vpow2.f32 %v1212_v21 }
 0x30a   : > { %v1214_v5 = vmul.f32 1.442695, %v1128_v43  ;;  %v1216_v33 = vmul.f32 1.442695, %v1129_v44  ;;  %1340 = vmatprep.subr.bf16.mxu1 %v1309_v4  ;;  %v1643_v55 = vpop.eup %1642 }
 0x30b   : > { %1341 = vmatpush1.bf16.xpose.msra.mxu1 %v1308_v36  ;;  %v1048_v60 = vpop.xlane.xlu1 %1047  ;;  %v1645_v6 = vpop.eup %1644 }
 0x30c   : > { %1654 = vpow2.f32 %v1214_v5  ;;  %v1130_v56 = vsub.f32 %v2117_v10, %v1048_v60  ;;  %v1131_v15 = vsub.f32 %v2119_v11, %v1048_v60 }
 0x30d   : > { %1656 = vpow2.f32 %v1216_v33 }
 0x30e   : > { %v1647_v38 = vpop.eup %1646  ;;  %v1218_v7 = vmul.f32 1.442695, %v1130_v56  ;;  %v1220_v8 = vmul.f32 1.442695, %v1131_v15 }
 0x30f   : > { %v1649_v46 = vpop.eup %1648  ;;  %v1051_v58 = vpop.xlane.xlu0 %1050  ;;  %v1310_v39 = vpack.c.bf16 %v1647_v38, %v1643_v55 }
 0x310   : > { %v1132_v59 = vsub.f32 %v2123_v13, %v1051_v58  ;;  %v1133_v47 = vsub.f32 %v2125_v14, %v1051_v58  ;;  %v1311_v9 = vpack.c.bf16 %v1649_v46, %v1645_v6  ;;  %1658 = vpow2.f32 %v1218_v7 }
 0x311   : > { %1660 = vpow2.f32 %v1220_v8 }
 0x312   : > { %v1222_v12 = vmul.f32 1.442695, %v1132_v59  ;;  %v1224_v51 = vmul.f32 1.442695, %v1133_v47  ;;  %1342 = vmatprep.subr.bf16.mxu1 %v1311_v9  ;;  %v1651_v11 = vpop.eup %1650 }
 0x313   : > { %1343 = vmatpush1.bf16.xpose.msra.mxu1 %v1310_v39  ;;  %v1054_v10 = vpop.xlane.xlu1 %1053  ;;  %v1653_v61 = vpop.eup %1652 }
 0x314   : > { %1662 = vpow2.f32 %v1222_v12  ;;  %v1134_v0 = vsub.f32 %v2129_v16, %v1054_v10  ;;  %v1135_v49 = vsub.f32 %v2131_v17, %v1054_v10 }
 0x315   : > { %1664 = vpow2.f32 %v1224_v51 }
 0x316   : > { %v1655_v62 = vpop.eup %1654  ;;  %v1226_v13 = vmul.f32 1.442695, %v1134_v0  ;;  %v1228_v14 = vmul.f32 1.442695, %v1135_v49 }
 0x317   : > { %v1657_v50 = vpop.eup %1656  ;;  %v1057_v30 = vpop.xlane.xlu0 %1056  ;;  %v1312_v24 = vpack.c.bf16 %v1655_v62, %v1651_v11 }
 0x318   : > { %v1136_v1 = vsub.f32 %v2135_v19, %v1057_v30  ;;  %v1137_v2 = vsub.f32 %v2137_v20, %v1057_v30  ;;  %v1313_v52 = vpack.c.bf16 %v1657_v50, %v1653_v61  ;;  %1666 = vpow2.f32 %v1226_v13 }
 0x319   : > { %1668 = vpow2.f32 %v1228_v14 }
 0x31a   : > { %v1230_v42 = vmul.f32 1.442695, %v1136_v1  ;;  %v1232_v18 = vmul.f32 1.442695, %v1137_v2  ;;  %1344 = vmatprep.subr.bf16.mxu1 %v1313_v52  ;;  %v1659_v17 = vpop.eup %1658 }
 0x31b   : > { %1345 = vmatpush1.bf16.xpose.msra.mxu1 %v1312_v24  ;;  %v1060_v16 = vpop.xlane.xlu1 %1059  ;;  %v1661_v36 = vpop.eup %1660 }
 0x31c   : > { %1670 = vpow2.f32 %v1230_v42  ;;  %v1138_v21 = vsub.f32 %v2141_v22, %v1060_v16  ;;  %v1139_v27 = vsub.f32 %v2143_v23, %v1060_v16 }
 0x31d   : > { %1672 = vpow2.f32 %v1232_v18 }
 0x31e   : > { %v1663_v43 = vpop.eup %1662  ;;  %v1234_v19 = vmul.f32 1.442695, %v1138_v21  ;;  %v1236_v20 = vmul.f32 1.442695, %v1139_v27 }
 0x31f   : > { %v1665_v44 = vpop.eup %1664  ;;  %v1063_v4 = vpop.xlane.xlu0 %1062  ;;  %v1314_v5 = vpack.c.bf16 %v1663_v43, %v1659_v17 }
 0x320   : > { %v1140_v33 = vsub.f32 %v2147_v25, %v1063_v4  ;;  %v1141_v60 = vsub.f32 %v2149_v26, %v1063_v4  ;;  %v1315_v55 = vpack.c.bf16 %v1665_v44, %v1661_v36  ;;  %1674 = vpow2.f32 %v1234_v19 }
 0x321   : > { %1676 = vpow2.f32 %v1236_v20 }
 0x322   : > { %v1238_v56 = vmul.f32 1.442695, %v1140_v33  ;;  %v1240_v15 = vmul.f32 1.442695, %v1141_v60  ;;  %1346 = vmatprep.subr.bf16.mxu1 %v1315_v55  ;;  %v1667_v23 = vpop.eup %1666 }
 0x323   : > { %1347 = vmatpush1.bf16.xpose.msra.mxu1 %v1314_v5  ;;  %v1066_v22 = vpop.xlane.xlu1 %1065  ;;  %v1669_v7 = vpop.eup %1668 }
 0x324   : > { %1678 = vpow2.f32 %v1238_v56  ;;  %v1142_v6 = vsub.f32 %v2153_v28, %v1066_v22  ;;  %v1143_v38 = vsub.f32 %v2155_v29, %v1066_v22  ;;  %v2419_v56 = vld [vmem:[#allocation5_spill] sm:$0xff]  ;;  %v2420_v22 = vld [vmem:[#allocation6_spill] sm:$0xff] }
 0x325   : > { %1680 = vpow2.f32 %v1240_v15 }
 0x326   : > { %v1671_v46 = vpop.eup %1670  ;;  %v1242_v25 = vmul.f32 1.442695, %v1142_v6  ;;  %v1244_v26 = vmul.f32 1.442695, %v1143_v38 }
 0x327   : > { %v1673_v8 = vpop.eup %1672  ;;  %v1069_v58 = vpop.xlane.xlu0 %1068  ;;  %v1316_v39 = vpack.c.bf16 %v1671_v46, %v1667_v23 }
 0x328   : > { %v1144_v59 = vsub.f32 %v2159_v31, %v1069_v58  ;;  %v1145_v47 = vsub.f32 %v2161_v32, %v1069_v58  ;;  %v1317_v9 = vpack.c.bf16 %v1673_v8, %v1669_v7  ;;  %1682 = vpow2.f32 %v1242_v25  ;;  %v2421_v8 = vld [vmem:[#allocation7_spill] sm:$0xff] }
 0x329   : > { %1684 = vpow2.f32 %v1244_v26  ;;  %v2422_v26 = vld [vmem:[#allocation8_spill] sm:$0xff] }
 0x32a   : > { %v1246_v12 = vmul.f32 1.442695, %v1144_v59  ;;  %v1248_v51 = vmul.f32 1.442695, %v1145_v47  ;;  %1348 = vmatprep.subr.bf16.mxu1 %v1317_v9  ;;  %v1675_v29 = vpop.eup %1674 }
 0x32b   : > { %1349 = vmatpush1.bf16.xpose.msra.mxu1 %v1316_v39  ;;  %v1072_v28 = vpop.xlane.xlu1 %1071  ;;  %v1677_v0 = vpop.eup %1676 }
 0x32c   : > { %1686 = vpow2.f32 %v1246_v12  ;;  %v1146_v10 = vsub.f32 %v2165_v34, %v1072_v28  ;;  %v1147_v11 = vsub.f32 %v2167_v35, %v1072_v28 }
 0x32d   : > { %1688 = vpow2.f32 %v1248_v51 }
 0x32e   : > { %v1679_v49 = vpop.eup %1678  ;;  %v1250_v31 = vmul.f32 1.442695, %v1146_v10  ;;  %v1252_v32 = vmul.f32 1.442695, %v1147_v11  ;;  %v2424_v11 = vld [vmem:[#allocation10_spill] sm:$0xff] }
 0x32f   : > { %v1681_v61 = vpop.eup %1680  ;;  %v1075_v62 = vpop.xlane.xlu0 %1074  ;;  %v1318_v13 = vpack.c.bf16 %v1679_v49, %v1675_v29  ;;  %v2423_v29 = vld [vmem:[#allocation9_spill] sm:$0xff] }
 0x330   : > { %v1148_v50 = vsub.f32 %v2171_v37, %v1075_v62  ;;  %v1149_v14 = vsub.f32 %v2173_v40, %v1075_v62  ;;  %v1319_v30 = vpack.c.bf16 %v1681_v61, %v1677_v0  ;;  %1690 = vpow2.f32 %v1250_v31  ;;  %v2425_v62 = vld [vmem:[#allocation11_spill] sm:$0xff] }
 0x331   : > { %1692 = vpow2.f32 %v1252_v32 }
 0x332   : > { %v1254_v24 = vmul.f32 1.442695, %v1148_v50  ;;  %v1256_v1 = vmul.f32 1.442695, %v1149_v14  ;;  %1350 = vmatprep.subr.bf16.mxu1 %v1319_v30  ;;  %v1683_v35 = vpop.eup %1682  ;;  %v2426_v50 = vld [vmem:[#allocation12_spill] sm:$0xff] }
 0x333   : > { %1351 = vmatpush1.bf16.xpose.msra.mxu1 %v1318_v13  ;;  %v1078_v34 = vpop.xlane.xlu1 %1077  ;;  %v1685_v42 = vpop.eup %1684 }
 0x334   : > { %1694 = vpow2.f32 %v1254_v24  ;;  %v1150_v2 = vsub.f32 %v2177_v45, %v1078_v34  ;;  %v1151_v52 = vsub.f32 %v2179_v48, %v1078_v34 }
 0x335   : > { %1696 = vpow2.f32 %v1256_v1 }
 0x336   : > { %v1687_v18 = vpop.eup %1686  ;;  %v1258_v37 = vmul.f32 1.442695, %v1150_v2  ;;  %v1260_v40 = vmul.f32 1.442695, %v1151_v52 }
 0x337   : > { %v1689_v16 = vpop.eup %1688  ;;  %v1081_v17 = vpop.xlane.xlu0 %1080  ;;  %v1320_v21 = vpack.c.bf16 %v1687_v18, %v1683_v35  ;;  %v2427_v18 = vld [vmem:[#allocation13_spill] sm:$0xff] }
 0x338   : > { %v1152_v27 = vsub.f32 %v2183_v54, %v1081_v17  ;;  %v1153_v36 = vsub.f32 %v2185_v57, %v1081_v17  ;;  %v1321_v43 = vpack.c.bf16 %v1689_v16, %v1685_v42  ;;  %1698 = vpow2.f32 %v1258_v37  ;;  %v2428_v16 = vld [vmem:[#allocation14_spill] sm:$0xff] }
 0x339   : > { %1700 = vpow2.f32 %v1260_v40 }
 0x33a   : > { %v1262_v19 = vmul.f32 1.442695, %v1152_v27  ;;  %v1264_v44 = vmul.f32 1.442695, %v1153_v36  ;;  %1352 = vmatprep.subr.bf16.mxu1 %v1321_v43  ;;  %v1691_v48 = vpop.eup %1690 }
 0x33b   : > { %1353 = vmatpush1.bf16.xpose.msra.mxu1 %v1320_v21  ;;  %v1084_v45 = vpop.xlane.xlu1 %1083  ;;  %v1693_v4 = vpop.eup %1692 }
 0x33c   : > { %1702 = vpow2.f32 %v1262_v19  ;;  %v1154_v20 = vsub.f32 %v2189_v63, %v1084_v45  ;;  %v1155_v33 = vsub.f32 %v2191_v3, %v1084_v45 }
 0x33d   : > { %1704 = vpow2.f32 %v1264_v44 }
 0x33e   : > { %v1695_v5 = vpop.eup %1694  ;;  %v1266_v60 = vmul.f32 1.442695, %v1154_v20  ;;  %v1268_v38 = vmul.f32 1.442695, %v1155_v33 }
 0x33f   : > { %v1697_v54 = vpop.eup %1696  ;;  %v1087_v57 = vpop.xlane.xlu0 %1086  ;;  %v1322_v55 = vpack.c.bf16 %v1695_v5, %v1691_v48 }
 0x340   : > { %v1156_v15 = vsub.f32 %v2419_v56, %v1087_v57  ;;  %v1157_v23 = vsub.f32 %v2420_v22, %v1087_v57  ;;  %v1323_v6 = vpack.c.bf16 %v1697_v54, %v1693_v4  ;;  %1706 = vpow2.f32 %v1266_v60  ;;  %v2429_v57 = vld [vmem:[#allocation19_spill] sm:$0xff]  ;;  %v2430_v22 = vld [vmem:[#allocation20_spill] sm:$0xff] }
 0x342   : > { %v1270_v7 = vmul.f32 1.442695, %v1156_v15  ;;  %v1272_v46 = vmul.f32 1.442695, %v1157_v23  ;;  %1354 = vmatprep.subr.bf16.mxu1 %v1323_v6  ;;  %v1699_v25 = vpop.eup %1698  ;;  %v2431_v6 = vld [vmem:[#allocation21_spill] sm:$0xff] }
 0x343   : > { %1355 = vmatpush1.bf16.xpose.msra.mxu1 %v1322_v55  ;;  %v1090_v63 = vpop.xlane.xlu1 %1089  ;;  %v1701_v39 = vpop.eup %1700 }
 0x344   : > { %1708 = vpow2.f32 %v1270_v7  ;;  %v1158_v3 = vsub.f32 %v2421_v8, %v1090_v63  ;;  %v1159_v58 = vsub.f32 %v2422_v26, %v1090_v63  ;;  %v2432_v7 = vld [vmem:[#allocation22_spill] sm:$0xff] }
 0x345   : > { %1710 = vpow2.f32 %v1272_v46 }
 0x346   : > { %v1703_v59 = vpop.eup %1702  ;;  %1712 = vpow2.f32 %v1268_v38  ;;  %v1274_v47 = vmul.f32 1.442695, %v1158_v3  ;;  %v1276_v12 = vmul.f32 1.442695, %v1159_v58  ;;  %v2433_v3 = vld [vmem:[#allocation17_spill] sm:$0xff]  ;;  %v2434_v58 = vld [vmem:[#allocation18_spill] sm:$0xff] }
 0x347   : > { %v1705_v9 = vpop.eup %1704  ;;  %v1093_v51 = vpop.xlane.xlu0 %1092  ;;  %v1324_v28 = vpack.c.bf16 %v1703_v59, %v1699_v25 }
 0x348   : > { %v1160_v10 = vsub.f32 %v2423_v29, %v1093_v51  ;;  %v1161_v0 = vsub.f32 %v2424_v11, %v1093_v51  ;;  %v1325_v49 = vpack.c.bf16 %v1705_v9, %v1701_v39  ;;  %1714 = vpow2.f32 %v1274_v47 }
 0x349   : > { %1716 = vpow2.f32 %v1276_v12  ;;  %v2435_v12 = vld [vmem:[#allocation15_spill] sm:$0xff] }
 0x34a   : > { %v1278_v31 = vmul.f32 1.442695, %v1160_v10  ;;  %v1280_v61 = vmul.f32 1.442695, %v1161_v0  ;;  %1356 = vmatprep.subr.bf16.mxu1 %v1325_v49  ;;  %v1707_v30 = vpop.eup %1706 }
 0x34b   : > { %1357 = vmatpush1.bf16.xpose.msra.mxu1 %v1324_v28  ;;  %v1096_v32 = vpop.xlane.xlu1 %1095  ;;  %v2436_v28 = vld [vmem:[#allocation16_spill] sm:$0xff] }
 0x34c   : > { %1718 = vpow2.f32 %v1278_v31  ;;  %v1162_v13 = vsub.f32 %v2425_v62, %v1096_v32  ;;  %v1163_v14 = vsub.f32 %v2426_v50, %v1096_v32 }
 0x34d   : > { %1720 = vpow2.f32 %v1280_v61 }
 0x34e   : > { %v1709_v24 = vpop.eup %1708  ;;  %v1282_v1 = vmul.f32 1.442695, %v1162_v13  ;;  %v1284_v35 = vmul.f32 1.442695, %v1163_v14 }
 0x34f   : > { %v1711_v34 = vpop.eup %1710  ;;  %v1099_v2 = vpop.xlane.xlu0 %1098  ;;  %v1326_v52 = vpack.c.bf16 %v1709_v24, %v1707_v30 }
 0x350   : > { %v1713_v42 = vpop.eup %1712  ;;  %v1164_v37 = vsub.f32 %v2427_v18, %v1099_v2  ;;  %v1165_v40 = vsub.f32 %v2428_v16, %v1099_v2  ;;  %1722 = vpow2.f32 %v1282_v1  ;;  %v446_v5 = vpop.permute.xlu1 %445 }
 0x351   : > { %v1327_v17 = vpack.c.bf16 %v1711_v34, %v1713_v42  ;;  %1724 = vpow2.f32 %v1284_v35  ;;  %v576_v55 = vadd.f32 %v2429_v57, %v446_v5  ;;  %v578_v23 = vadd.f32 %v2430_v22, %v446_v5 }
 0x352   : > { %v1286_v21 = vmul.f32 1.442695, %v1164_v37  ;;  %v1288_v27 = vmul.f32 1.442695, %v1165_v40  ;;  %v1715_v36 = vpop.eup %1714  ;;  %v1387_v42 = vlaneseq }
 0x353   : > { %1358 = vmatprep.subr.bf16.mxu1 %v1327_v17  ;;  %v1717_v43 = vpop.eup %1716 }
 0x354   : > { %1726 = vpow2.f32 %v1286_v21  ;;  %1359 = vmatpush1.bf16.xpose.msra.mxu1 %v1326_v52  ;;  %v1388_v16 = vshrl.u32 %v1387_v42, 7 }
 0x355   : > { %1728 = vpow2.f32 %v1288_v27 }
 0x356   : > { %v1719_v19 = vpop.eup %1718  ;;  %v1389_v40 = vsub.s32 0, %v1388_v16 }
 0x357   : > { %v1721_v44 = vpop.eup %1720  ;;  %v1328_v45 = vpack.c.bf16 %v1719_v19, %v1715_v36  ;;  %v1105_v20 = vpop.xlane.xlu0 %1104 }
 0x358   : > { %v1329_v48 = vpack.c.bf16 %v1721_v44, %v1717_v43  ;;  %v1168_v26 = vsub.f32 %v2433_v3, %v1105_v20  ;;  %v1169_v39 = vsub.f32 %v2434_v58, %v1105_v20 }
 0x35a   : > { %1360 = vmatprep.subr.bf16.mxu1 %v1329_v48  ;;  %v1723_v4 = vpop.eup %1722  ;;  %v1294_v59 = vmul.f32 1.442695, %v1168_v26  ;;  %v1296_v47 = vmul.f32 1.442695, %v1169_v39 }
 0x35b   : > { %v1725_v33 = vpop.eup %1724 }
 0x35c   : > { %1361 = vmatpush1.bf16.xpose.msra.mxu1 %v1328_v45  ;;  %1730 = vpow2.f32 %v1294_v59 }
 0x35d   : > { %1732 = vpow2.f32 %v1296_v47 }
 0x35e   : > { %v1727_v54 = vpop.eup %1726 }
 0x35f   : > { %v1729_v60 = vpop.eup %1728  ;;  %v451_v56 = vpop.permute.xlu0 %450  ;;  %v1330_v15 = vpack.c.bf16 %v1727_v54, %v1723_v4 }
 0x360   : > { %v582_v38 = vadd.f32 %v2431_v6, %v451_v56  ;;  %v584_v46 = vadd.f32 %v2432_v7, %v451_v56  ;;  %v1331_v63 = vpack.c.bf16 %v1729_v60, %v1725_v33 }
 0x362   : > { %v1298_v25 = vpack.c.bf16 %v582_v38, %v576_v55  ;;  %v1299_v8 = vpack.c.bf16 %v584_v46, %v578_v23  ;;  %1362 = vmatprep.subr.bf16.mxu1 %v1331_v63 }
 0x364   : > { %1363 = vmatpush1.bf16.xpose.msra.mxu1 %v1330_v15  ;;  %1366 = vmatprep.mubr.bf16.mxu1 %v1299_v8 }
 0x366   : > { %v1731_v0 = vpop.eup %1730 }
 0x367   : > { %v1733_v49 = vpop.eup %1732 }
 0x380   : > { %v1102_v9 = vpop.xlane.xlu1 %1101 }
 0x381   : > { %v1166_v51 = vsub.f32 %v2435_v12, %v1102_v9  ;;  %v1167_v29 = vsub.f32 %v2436_v28, %v1102_v9 }
 0x383   : > { %v1290_v10 = vmul.f32 1.442695, %v1166_v51  ;;  %v1292_v11 = vmul.f32 1.442695, %v1167_v29 }
 0x384   : > { %v456_v13 = vpop.permute.xlu1 %455 }
 0x385   : > { %1734 = vpow2.f32 %v1290_v10  ;;  %v590_v50 = vadd.f32 %v2278_v53, %v456_v13  ;;  %v588_v30 = vadd.f32 %v2276_v41, %v456_v13 }
 0x386   : > { %1736 = vpow2.f32 %v1292_v11 }
 0x387   : > { %v1301_v14 = vpack.c.bf16 %v590_v50, %v590_v50  ;;  %v1300_v24 = vpack.c.bf16 %v588_v30, %v588_v30 }
 0x38f   : > { %v1735_v31 = vpop.eup %1734 }
 0x390   : > { %v1737_v61 = vpop.eup %1736  ;;  %v1332_v32 = vpack.c.bf16 %v1731_v0, %v1735_v31 }
 0x391   : > { %v1333_v62 = vpack.c.bf16 %v1733_v49, %v1737_v61 }
 0x393   : > { %1364 = vmatprep.subr.bf16.mxu1 %v1333_v62 }
 0x394   : > { %1365 = vmatpush1.bf16.xpose.msra.mxu1 %v1332_v32 }
 0x39b   : > { %1367 = vmatmul.mubr.bf16.vlgmr.msra.gmra.mrb[16].mxu1 %v1298_v25 }
 0x39c   : > { %1376 = vmatprep.mubr.bf16.mxu1 %v1301_v14 }
 0x3a3   : > { %1377 = vmatmul.mubr.bf16.gmra.mrb[20].mxu1 %v1300_v24 }
 0x46e   : > { %v1368_v1 = vpop.f32.mrb[16].mxu1 }
 0x46f   : > { %v1370_v34 = vpop.f32.mrb[17].mxu1 }
 0x470   : > { %v1372_v35 = vpop.f32.mrb[18].mxu1 }
 0x471   : > { %v1374_v2 = vpop.f32.mrb[19].mxu1 }
 0x476   : > { %v1378_v52 = vpop.f32.mrb[20].mxu1 }
 0x477   : > { %1738 = vrcp.f32 %v1378_v52  ;;  %v1380_v18 = vpop.f32.mrb[21].mxu1 }
 0x478   : > { %1740 = vrcp.f32 %v1380_v18  ;;  %v1382_v37 = vpop.f32.mrb[22].mxu1 }
 0x479   : > { %v1383_v53 = vpop.f32.mrb[23].mxu1 }
 0x481   : > { %v1739_v17 = vpop.eup %1738 }
 0x482   : > { %v1741_v41 = vpop.eup %1740  ;;  %v1390_v21 = vrot.slane %v1739_v17, %v1389_v40 }
 0x483   : > { %v1394_v27 = vrot.slane %v1741_v41, %v1389_v40 }
 0x484   : > { %v1395_v36 = vmul.f32 %v1390_v21, %v1368_v1  ;;  %v1397_v43 = vmul.f32 %v1390_v21, %v1372_v35 }
 0x485   : > { %v1396_v19 = vmul.f32 %v1394_v27, %v1370_v34  ;;  %v1398_v44 = vmul.f32 %v1394_v27, %v1374_v2 }
 0x486   : > { %1399 = vst [vmem:[%s259_s19] sm:$0xff] %v1395_v36  ;;  %1401 = vst [vmem:[%s259_s19 + $0x10] sm:$0xff] %v1397_v43 }
 0x487   : > { %1400 = vst [vmem:[%s259_s19 + $0x8] sm:$0xff] %v1396_v19  ;;  %1402 = vst [vmem:[%s259_s19 + $0x18] sm:$0xff] %v1398_v44 }
 0x488   : > { %1755 = shalt.err (!%p1752_p3)
}
 0x489   : > { %s1756_s13 = scalar_lea.hbm %s2333_s29, 512  ;;  %s1760_s16 = scalar_lea.hbm %s2384_s6, 1024 }
 0x48a   : > { %p1757_p4 = scmp.ne.s32.totalorder %s2333_s29, %s1756_s13  ;;  %p1761_p9 = scmp.lt.u32.totalorder %s2333_s29, %s2384_s6 }
 0x48b   : > { %p1762_p10 = scmp.lt.u32.totalorder %s1760_s16, %s1756_s13  ;;  %p1764_p12 = scmp.lt.u32.totalorder %s1756_s13, %s2333_s29 }
 0x48c   : > { %p1758_p7 = pnand %p1757_p4, %p1884_p5 }
 0x48d   : > { %p1763_p11 = por %p1762_p10, %p1761_p9 }
 0x48e   : > { %p1759_p8 = pneg %p1758_p7 }
 0x48f   : > { %p1765_p13 = por %p1764_p12, %p1763_p11 }
 0x491   : > { %p1766_p0 = pnand %p1765_p13, %p1759_p8 }
 0x493   : > { %1769 = shalt.err (!%p1766_p0)
}
 0x494   : > { %s1809_s19 = smov 256   ;;  %s1810_s26 = smov 16  }
 0x495   : > { %1563 = dma.vmem_to_hbm [thread:$0]  (%p1884_p5), %s2335_s20, 512, %s2333_s29, %s2337_s25, %s1809_s19, %s1809_s19, %s1810_s26  }
 0x496 PF: > { %p1569_p1 = scmp.ge.s32.totalorder %s1804_s24, 2  ;;  %s1432_s28 = sand.u32 1, %s1792_s21  }
 0x497   : > { %s1433_s10 = scalar_lea.sflag [#allocation3], %s1432_s28 }
 0x498   : > { %p1566_p2 = pnand %p1569_p1, %p1888_p6 }
 0x49a   : > { %1787 = dma.done.wait (!%p1566_p2), %s1433_s10, 512  }
 0x49b   : > { %1789 = vsyncadd (!%p1566_p2), %s1433_s10, 4294966784  ;;  %p16_p3 = scmp.ge.s32.totalorder %s1871_s27, 4   ;;  %s2437_s21 = smov %s1796_s22 }
 0x49c   : > { %s2438_s22 = smov %s1800_s23  ;;  %s2439_s23 = smov %s1882_s30 }
 0x49d   : > { %s2440_s24 = smov %s1871_s27  ;;  %18 = sbr.rel (!%p16_p3) target bundleno = 3 (0x3), region = 82 }
 0x4a4   :  { %1438 = vsyncpa [#allocation3], 1 }
 0x4a5   :  { %1440 = vsyncpa [#allocation3 + $0x1], 1 }

</bundles_post_ra>
